<compile_context>
chip_gen: v5e
topology: v5e:2x2
jax: 0.10.0
libtpu: 0.0.40
codegen_flags: <defaults>
</compile_context>

<pallas_src>
import functools

import jax
import jax.numpy as jnp
from jax import lax
from jax.experimental import pallas as pl
from jax.experimental.pallas import tpu as pltpu

# Large finite negative: exp() underflows cleanly to 0, no inf/NaN edge cases,
# representable in bf16.
_MASK_VAL = -1e30


# ----------------------------------------------------------------------------
# Pass 1: logits (cached), per-topic online max / sum-exp over the vocab axis.
# ----------------------------------------------------------------------------
def _etm_stats_kernel(alphas_ref, rho_t_ref, s_ref, m_ref, z_ref, m_sc, z_sc,
                      *, tile_v, v_total, num_grid_axes, tiles_per_core):
    tile_ax = num_grid_axes - 1
    j = pl.program_id(tile_ax)

    @pl.when(j == 0)
    def _():
        m_sc[...] = jnp.full_like(m_sc, _MASK_VAL)
        z_sc[...] = jnp.zeros_like(z_sc)

    # sT[t, v] = sum_e alphas[t, e] * rho_T[e, v]  == (rho @ alphas.T).T tile
    s32 = lax.dot_general(
        alphas_ref[...], rho_t_ref[...],
        dimension_numbers=(((1,), (0,)), ((), ())),
        preferred_element_type=jnp.float32,
    )                                                        # [T, tile_v] f32

    if v_total % tile_v != 0:
        # Tail tile: mask vocab rows beyond V so they add no softmax mass.
        if num_grid_axes == 2:
            tile_idx = pl.program_id(0) * tiles_per_core + j
        else:
            tile_idx = j
        col = lax.broadcasted_iota(jnp.int32, s32.shape, 1)
        s32 = jnp.where(tile_idx * tile_v + col < v_total, s32, _MASK_VAL)

    # Store the logits once; compute the stats from the exact (possibly
    # bf16-rounded) values pass 2 will read back, so m/Z stay consistent.
    s_store = s32.astype(s_ref.dtype)
    s_ref[...] = s_store
    s_used = s_store.astype(jnp.float32)

    m_tile = jnp.max(s_used, axis=1, keepdims=True)          # [T, 1] lane reduce
    m_new = jnp.maximum(m_sc[...], m_tile)
    z_sc[...] = (z_sc[...] * jnp.exp(m_sc[...] - m_new)
                 + jnp.sum(jnp.exp(s_used - m_new), axis=1, keepdims=True))
    m_sc[...] = m_new

    @pl.when(j == pl.num_programs(tile_ax) - 1)
    def _():
        m_ref[...] = m_sc[...]
        z_ref[...] = z_sc[...]


# ----------------------------------------------------------------------------
# Pass 2: p = exp(sT - m), out_tile = p^T @ (x / Z)   (1/Z pre-folded into x).
# ----------------------------------------------------------------------------
def _etm_out_kernel(s_ref, x_ref, m_ref, o_ref):
    p = jnp.exp(s_ref[...].astype(jnp.float32) - m_ref[...])   # [T, tile_v]
    # out[v, n] = sum_t p[t, v] * x_scaled[t, n]
    o_ref[...] = lax.dot_general(
        p.astype(x_ref.dtype), x_ref[...],
        dimension_numbers=(((0,), (0,)), ((), ())),
        preferred_element_type=jnp.float32,
    ).astype(o_ref.dtype)


# ----------------------------------------------------------------------------
# Tile-size heuristic: biggest multiple of 128 whose double-buffered pipeline
# footprint fits the VMEM budget (works for v5e 16MiB default scoped / v7x 64MiB).
# ----------------------------------------------------------------------------
def _pick_tile_v(V, T, E, N, cd_bytes, out_bytes, budget_bytes):
    per_v_pass1 = 2 * (E * cd_bytes + T * cd_bytes)          # rho_T in + sT out
    per_v_pass2 = 2 * (T * cd_bytes + N * out_bytes)         # sT in + out tile
    per_v = max(per_v_pass1, per_v_pass2)
    cap = max(128, (budget_bytes // per_v) // 128 * 128)
    v128 = -(-V // 128) * 128
    tile = min(v128, 2048, cap)
    tile = max(tile, min(512, v128, cap))                    # never tiny tiles
    return int(tile)


# ----------------------------------------------------------------------------
# Wrapper
# ----------------------------------------------------------------------------
def conv1d_softmax_etm(rho, alphas, x, *, tile_v=None,
                       compute_dtype=jnp.bfloat16, out_dtype=jnp.bfloat16,
                       vmem_budget_bytes=16 * 1024 * 1024):
    """rho: [V, E], alphas: [T, E], x: [T, N] -> softmax(rho@alphas.T, 0) @ x.

    Defaults are the perf configuration (bf16 operands / bf16 output with f32
    accumulation). Pass compute_dtype=out_dtype=jnp.float32 for a strict path.
    """
    V, E = rho.shape
    T, E2 = alphas.shape
    assert E2 == E
    T2, N = x.shape
    assert T2 == T

    cd_bytes = jnp.dtype(compute_dtype).itemsize
    ob_bytes = jnp.dtype(out_dtype).itemsize

    if tile_v is None:
        tile_v = _pick_tile_v(V, T, E, N, cd_bytes, ob_bytes, vmem_budget_bytes)
    assert tile_v % 128 == 0, "tile_v must be a multiple of 128"

    num_tiles = -(-V // tile_v)
    v_pad = num_tiles * tile_v

    # Split the pass-1 vocab reduction across the 2 TensorCores (v7x megacore).
    # On single-core chips the "parallel" axis simply runs sequentially.
    use_split = (num_tiles >= 2) and (num_tiles % 2 == 0) and (T % 8 == 0)
    n_cores = 2 if use_split else 1
    tiles_per_core = num_tiles // n_cores

    # rho presented as [E, V]: lane-dense V tiles feed the MXU directly.
    # (In a real model store the parameter transposed; here the cast+transpose
    #  is one fused XLA copy done once.)
    rho_t = jnp.asarray(rho).astype(compute_dtype).T          # [E, V]
    alphas_c = jnp.asarray(alphas).astype(compute_dtype)      # [T, E]
    x_f32 = jnp.asarray(x).astype(jnp.float32)                # [T, N]

    cparams = dict(vmem_limit_bytes=32 * 1024 * 1024)

    # -------------------------------------------------------------- pass 1
    if use_split:
        grid1 = (2, tiles_per_core)
        alphas_spec = pl.BlockSpec((T, E), lambda c, j: (0, 0))
        rho_spec = pl.BlockSpec((E, tile_v), lambda c, j: (0, c * tiles_per_core + j))
        s_out_spec = pl.BlockSpec((T, tile_v), lambda c, j: (0, c * tiles_per_core + j))
        stat_spec = pl.BlockSpec((T, 1), lambda c, j: (c, 0))
        sem1 = ("parallel", "arbitrary")
    else:
        grid1 = (num_tiles,)
        alphas_spec = pl.BlockSpec((T, E), lambda j: (0, 0))
        rho_spec = pl.BlockSpec((E, tile_v), lambda j: (0, j))
        s_out_spec = pl.BlockSpec((T, tile_v), lambda j: (0, j))
        stat_spec = pl.BlockSpec((T, 1), lambda j: (0, 0))
        sem1 = ("arbitrary",)

    stats_kernel = functools.partial(
        _etm_stats_kernel, tile_v=tile_v, v_total=V,
        num_grid_axes=len(grid1), tiles_per_core=tiles_per_core)

    stats_cost = pl.CostEstimate(
        flops=int(2 * T * E * v_pad + 6 * T * v_pad),
        transcendentals=int(2 * T * v_pad),
        bytes_accessed=int(E * V * cd_bytes + T * E * cd_bytes
                           + T * v_pad * cd_bytes + 2 * n_cores * T * 4),
    )

    s_t, m_part, z_part = pl.pallas_call(
        stats_kernel,
        out_shape=(jax.ShapeDtypeStruct((T, v_pad), compute_dtype),
                   jax.ShapeDtypeStruct((n_cores * T, 1), jnp.float32),
                   jax.ShapeDtypeStruct((n_cores * T, 1), jnp.float32)),
        grid=grid1,
        in_specs=[alphas_spec, rho_spec],
        out_specs=(s_out_spec, stat_spec, stat_spec),
        scratch_shapes=[pltpu.VMEM((T, 1), jnp.float32),
                        pltpu.VMEM((T, 1), jnp.float32)],
        compiler_params=pltpu.CompilerParams(dimension_semantics=sem1, **cparams),
        cost_estimate=stats_cost,
    )(alphas_c, rho_t)

    # -------------------------------- merge per-core partials, fold 1/Z into x
    m_part = m_part.reshape(n_cores, T, 1)
    z_part = z_part.reshape(n_cores, T, 1)
    m = jnp.max(m_part, axis=0)                               # [T, 1]
    z = jnp.sum(z_part * jnp.exp(m_part - m), axis=0)         # [T, 1]
    x_scaled = (x_f32 / z).astype(compute_dtype)              # [T, N]

    # -------------------------------------------------------------- pass 2
    out_cost = pl.CostEstimate(
        flops=int(2 * T * N * v_pad + 2 * T * v_pad),
        transcendentals=int(T * v_pad),
        bytes_accessed=int(T * v_pad * cd_bytes + T * N * cd_bytes
                           + T * 4 + V * N * ob_bytes),
    )

    out = pl.pallas_call(
        _etm_out_kernel,
        out_shape=jax.ShapeDtypeStruct((V, N), out_dtype),
        grid=(num_tiles,),
        in_specs=[pl.BlockSpec((T, tile_v), lambda i: (0, i)),   # cached logits
                  pl.BlockSpec((T, N), lambda i: (0, 0)),        # x/Z resident
                  pl.BlockSpec((T, 1), lambda i: (0, 0))],       # m resident
        out_specs=pl.BlockSpec((tile_v, N), lambda i: (i, 0)),   # lane-dense out
        compiler_params=pltpu.CompilerParams(
            dimension_semantics=("parallel",), **cparams),       # megacore on v7x
        cost_estimate=out_cost,
    )(s_t, x_scaled, m)
    return out


def reference(rho, alphas, x):
    w = jnp.dot(rho, alphas.T, precision=lax.Precision.HIGHEST)
    w = jax.nn.softmax(w, axis=0)
    return jnp.dot(w, x, precision=lax.Precision.HIGHEST)


if __name__ == "__main__":
    # Small shapes consistent with the module; V chosen so the multi-tile,
    # dual-core-split, and tail-masking paths are all exercised.
    voc_size, topic_size, emb_size, n_docs = 1920, 8, 32, 128

    key = jax.random.PRNGKey(0)
    k_rho, k_alpha, k_x = jax.random.split(key, 3)

    # Deterministic parameter init mirroring nn.init.normal_(std=0.02)
    rho = 0.02 * jax.random.normal(k_rho, (voc_size, emb_size), jnp.float32)
    alphas = 0.02 * jax.random.normal(k_alpha, (topic_size, emb_size), jnp.float32)
    # Input x as the torch x.view(-1, x.size(-1)) result: [T, N]
    x = jax.random.normal(k_x, (topic_size, n_docs), jnp.float32)

    ref = reference(rho, alphas, x)

    # (a) f32 structural check: 4 tiles (even -> dual-core pass-1 split) + tail mask.
    out_f32 = conv1d_softmax_etm(rho, alphas, x, tile_v=512,
                                 compute_dtype=jnp.float32, out_dtype=jnp.float32)
    out_f32 = jax.block_until_ready(out_f32)
    assert out_f32.shape == (voc_size, n_docs)
    assert jnp.allclose(out_f32, ref, atol=1e-4, rtol=1e-3), "f32 mismatch vs reference"

    # (b) Odd tile count (no core split) + tail mask, bf16 perf dtypes.
    out_odd = conv1d_softmax_etm(rho, alphas, x, tile_v=768)
    out_odd = jax.block_until_ready(out_odd)
    assert jnp.allclose(out_odd.astype(jnp.float32), ref, atol=2e-3, rtol=5e-2), \
        "bf16 (odd-tile) mismatch vs reference"

    # (c) Default perf configuration (auto tile_v, bf16 operands + bf16 output).
    out_def = conv1d_softmax_etm(rho, alphas, x)
    out_def = jax.block_until_ready(out_def)
    assert out_def.shape == (voc_size, n_docs)
    assert out_def.dtype == jnp.bfloat16
    assert jnp.allclose(out_def.astype(jnp.float32), ref, atol=2e-3, rtol=5e-2), \
        "bf16 mismatch vs reference"

    # TODO(synk): the `t` argument only toggles .detach() (autograd), which has no
    # forward-pass effect, so it is intentionally omitted.
    print("KERNEL_OK")
</pallas_src>

<mosaic_0001>
module attributes {stable_mosaic.version = 11 : i64} {
  func.func @_etm_stats_kernel(%arg0: i32, %arg1: i32, %arg2: memref<8x32xf32, #tpu.memory_space<vmem>>, %arg3: memref<32x512xf32, #tpu.memory_space<vmem>>, %arg4: memref<8x512xf32, #tpu.memory_space<vmem>>, %arg5: memref<8x1xf32, #tpu.memory_space<vmem>>, %arg6: memref<8x1xf32, #tpu.memory_space<vmem>>, %arg7: memref<8x1xf32, #tpu.memory_space<vmem>>, %arg8: memref<8x1xf32, #tpu.memory_space<vmem>>) attributes {dimension_semantics = [#tpu.dimension_semantics<parallel>, #tpu.dimension_semantics<arbitrary>], iteration_bounds = array<i64: 2, 2>, scalar_prefetch = 0 : i64, scratch_operands = 2 : i64, tpu.core_type = #tpu.core_type<tc>, window_params = [{pipeline_mode = #tpu.pipeline_mode<synchronous>, transform_indices = @transform_0, window_bounds = array<i64: 8, 32>}, {transform_indices = @transform_1, window_bounds = array<i64: 32, 512>}, {transform_indices = @transform_2, window_bounds = array<i64: 8, 512>}, {transform_indices = @transform_3, window_bounds = array<i64: 8, 1>}, {transform_indices = @transform_4, window_bounds = array<i64: 8, 1>}]} {
    %c0_i32 = arith.constant 0 : i32
    %0 = arith.cmpi eq, %arg1, %c0_i32 : i32
    %1 = arith.extui %0 : i1 to i32
    %c0_i32_0 = arith.constant 0 : i32
    %2 = arith.cmpi ne, %1, %c0_i32_0 : i32
    scf.if %2 {
      %cst_20 = arith.constant -1.000000e+30 : f32
      %37 = vector.broadcast %cst_20 : f32 to vector<8x1xf32>
      %c0_21 = arith.constant 0 : index
      %c0_22 = arith.constant 0 : index
      %38 = vector.load %arg7[%c0_21, %c0_22] : memref<8x1xf32, #tpu.memory_space<vmem>>, vector<8x1xf32>
      tpu.vector_store %arg7[%c0_21, %c0_22], %37 {strides = array<i32>} : memref<8x1xf32, #tpu.memory_space<vmem>>, vector<8x1xf32>,
      %cst_23 = arith.constant 0.000000e+00 : f32
      %39 = vector.broadcast %cst_23 : f32 to vector<8x1xf32>
      %c0_24 = arith.constant 0 : index
      %c0_25 = arith.constant 0 : index
      %40 = vector.load %arg8[%c0_24, %c0_25] : memref<8x1xf32, #tpu.memory_space<vmem>>, vector<8x1xf32>
      tpu.vector_store %arg8[%c0_24, %c0_25], %39 {strides = array<i32>} : memref<8x1xf32, #tpu.memory_space<vmem>>, vector<8x1xf32>,
    } else {
    }
    %c0 = arith.constant 0 : index
    %c0_1 = arith.constant 0 : index
    %3 = vector.load %arg2[%c0, %c0_1] : memref<8x32xf32, #tpu.memory_space<vmem>>, vector<8x32xf32>
    %c0_2 = arith.constant 0 : index
    %c0_3 = arith.constant 0 : index
    %4 = vector.load %arg3[%c0_2, %c0_3] : memref<32x512xf32, #tpu.memory_space<vmem>>, vector<32x512xf32>
    %cst = arith.constant dense<0.000000e+00> : vector<8x512xf32>
    %5 = tpu.matmul %3, %4, %cst {dimension_numbers = #tpu.dot_dimension_numbers<[1], [0], [0], [1], [0, 0, 1, 1], [], []>} : vector<8x32xf32>, vector<32x512xf32>, vector<8x512xf32> -> vector<8x512xf32>
    %c2_i32 = arith.constant 2 : i32
    %6 = arith.muli %arg0, %c2_i32 : i32
    %7 = arith.addi %6, %arg1 : i32
    %8 = tpu.iota {dimensions = array<i32: 1>} : vector<8x512xi32>
    %c512_i32 = arith.constant 512 : i32
    %9 = arith.muli %7, %c512_i32 : i32
    %10 = vector.broadcast %9 : i32 to vector<8x512xi32>
    %11 = arith.addi %10, %8 : vector<8x512xi32>
    %c1920_i32 = arith.constant 1920 : i32
    %12 = vector.broadcast %c1920_i32 : i32 to vector<8x512xi32>
    %13 = arith.cmpi slt, %11, %12 : vector<8x512xi32>
    %cst_4 = arith.constant -1.000000e+30 : f32
    %14 = vector.broadcast %cst_4 : f32 to vector<8x512xf32>
    %15 = arith.select %13, %5, %14 : vector<8x512xi1>, vector<8x512xf32>
    %c0_5 = arith.constant 0 : index
    %c0_6 = arith.constant 0 : index
    %16 = vector.load %arg4[%c0_5, %c0_6] : memref<8x512xf32, #tpu.memory_space<vmem>>, vector<8x512xf32>
    tpu.vector_store %arg4[%c0_5, %c0_6], %15 {strides = array<i32>} : memref<8x512xf32, #tpu.memory_space<vmem>>, vector<8x512xf32>,
    %cst_7 = arith.constant dense<0xFF800000> : vector<8xf32>
    %17 = vector.multi_reduction <maximumf>, %15, %cst_7 [1] : vector<8x512xf32> to vector<8xf32>
    %18 = vector.shape_cast %17 : vector<8xf32> to vector<8x1xf32>
    %c0_8 = arith.constant 0 : index
    %c0_9 = arith.constant 0 : index
    %19 = vector.load %arg7[%c0_8, %c0_9] : memref<8x1xf32, #tpu.memory_space<vmem>>, vector<8x1xf32>
    %20 = arith.maximumf %19, %18 : vector<8x1xf32>
    %c0_10 = arith.constant 0 : index
    %c0_11 = arith.constant 0 : index
    %21 = vector.load %arg8[%c0_10, %c0_11] : memref<8x1xf32, #tpu.memory_space<vmem>>, vector<8x1xf32>
    %c0_12 = arith.constant 0 : index
    %c0_13 = arith.constant 0 : index
    %22 = vector.load %arg7[%c0_12, %c0_13] : memref<8x1xf32, #tpu.memory_space<vmem>>, vector<8x1xf32>
    %23 = arith.subf %22, %20 : vector<8x1xf32>
    %24 = math.exp %23 : vector<8x1xf32>
    %25 = arith.mulf %21, %24 : vector<8x1xf32>
    %26 = vector.broadcast %20 : vector<8x1xf32> to vector<8x512xf32>
    %27 = arith.subf %15, %26 : vector<8x512xf32>
    %28 = math.exp %27 : vector<8x512xf32>
    %cst_14 = arith.constant dense<0.000000e+00> : vector<8xf32>
    %29 = vector.multi_reduction <add>, %28, %cst_14 [1] : vector<8x512xf32> to vector<8xf32>
    %30 = vector.shape_cast %29 : vector<8xf32> to vector<8x1xf32>
    %31 = arith.addf %25, %30 : vector<8x1xf32>
    %c0_15 = arith.constant 0 : index
    %c0_16 = arith.constant 0 : index
    %32 = vector.load %arg8[%c0_15, %c0_16] : memref<8x1xf32, #tpu.memory_space<vmem>>, vector<8x1xf32>
    tpu.vector_store %arg8[%c0_15, %c0_16], %31 {strides = array<i32>} : memref<8x1xf32, #tpu.memory_space<vmem>>, vector<8x1xf32>,
    %c0_17 = arith.constant 0 : index
    %c0_18 = arith.constant 0 : index
    %33 = vector.load %arg7[%c0_17, %c0_18] : memref<8x1xf32, #tpu.memory_space<vmem>>, vector<8x1xf32>
    tpu.vector_store %arg7[%c0_17, %c0_18], %20 {strides = array<i32>} : memref<8x1xf32, #tpu.memory_space<vmem>>, vector<8x1xf32>,
    %c1_i32 = arith.constant 1 : i32
    %34 = arith.cmpi eq, %arg1, %c1_i32 : i32
    %35 = arith.extui %34 : i1 to i32
    %c0_i32_19 = arith.constant 0 : i32
    %36 = arith.cmpi ne, %35, %c0_i32_19 : i32
    scf.if %36 {
      %c0_20 = arith.constant 0 : index
      %c0_21 = arith.constant 0 : index
      %37 = vector.load %arg7[%c0_20, %c0_21] : memref<8x1xf32, #tpu.memory_space<vmem>>, vector<8x1xf32>
      %c0_22 = arith.constant 0 : index
      %c0_23 = arith.constant 0 : index
      %38 = vector.load %arg5[%c0_22, %c0_23] : memref<8x1xf32, #tpu.memory_space<vmem>>, vector<8x1xf32>
      tpu.vector_store %arg5[%c0_22, %c0_23], %37 {strides = array<i32>} : memref<8x1xf32, #tpu.memory_space<vmem>>, vector<8x1xf32>,
      %c0_24 = arith.constant 0 : index
      %c0_25 = arith.constant 0 : index
      %39 = vector.load %arg8[%c0_24, %c0_25] : memref<8x1xf32, #tpu.memory_space<vmem>>, vector<8x1xf32>
      %c0_26 = arith.constant 0 : index
      %c0_27 = arith.constant 0 : index
      %40 = vector.load %arg6[%c0_26, %c0_27] : memref<8x1xf32, #tpu.memory_space<vmem>>, vector<8x1xf32>
      tpu.vector_store %arg6[%c0_26, %c0_27], %39 {strides = array<i32>} : memref<8x1xf32, #tpu.memory_space<vmem>>, vector<8x1xf32>,
    } else {
    }
    return
  }
  func.func @transform_0(%arg0: i32, %arg1: i32) -> (i32, i32) {
    %c0_i32 = arith.constant 0 : i32
    %c0_i32_0 = arith.constant 0 : i32
    %c0_i32_1 = arith.constant 0 : i32
    return %c0_i32, %c0_i32_0 : i32, i32
  }
  func.func @transform_1(%arg0: i32, %arg1: i32) -> (i32, i32) {
    %c2_i32 = arith.constant 2 : i32
    %0 = arith.muli %arg0, %c2_i32 : i32
    %1 = arith.addi %0, %arg1 : i32
    %c0_i32 = arith.constant 0 : i32
    %c0_i32_0 = arith.constant 0 : i32
    return %c0_i32, %1 : i32, i32
  }
  func.func @transform_2(%arg0: i32, %arg1: i32) -> (i32, i32) {
    %c2_i32 = arith.constant 2 : i32
    %0 = arith.muli %arg0, %c2_i32 : i32
    %1 = arith.addi %0, %arg1 : i32
    %c0_i32 = arith.constant 0 : i32
    %c0_i32_0 = arith.constant 0 : i32
    return %c0_i32, %1 : i32, i32
  }
  func.func @transform_3(%arg0: i32, %arg1: i32) -> (i32, i32) {
    %c0_i32 = arith.constant 0 : i32
    %c0_i32_0 = arith.constant 0 : i32
    return %arg0, %c0_i32 : i32, i32
  }
  func.func @transform_4(%arg0: i32, %arg1: i32) -> (i32, i32) {
    %c0_i32 = arith.constant 0 : i32
    %c0_i32_0 = arith.constant 0 : i32
    return %arg0, %c0_i32 : i32, i32
  }
}

</mosaic_0001>

<bundles_post_ra>
// kernel: tpu_custom_call.1
= control target key start
LH: loop header
LB: loop body
LE: loop exit
PB: predicated region body
PF: predicated region fallthrough
CT: control target
= control target key end

     0   :  { %s1236_s0 = inlined_call_operand.hbm [shape: f32[8,32], index: 0, kind: input, shape index: {}]   ;;  %s1237_s1 = inlined_call_operand.hbm [shape: f32[32,1920], index: 1, kind: input, shape index: {}]   ;;  %s1238_s2 = inlined_call_operand.hbm [shape: f32[8,2048], index: 2, kind: output, shape index: {0}]   ;;  %s1239_s3 = inlined_call_operand.vmem [shape: f32[16,1], index: 3, kind: output, shape index: {1}]   ;;  %s1240_s4 = inlined_call_operand.vmem [shape: f32[16,1], index: 4, kind: output, shape index: {2}]  }
   0x1   :  { %1246 = sst [smem:[#allocation19_spill]] %s1236_s0 }
   0x2   :  { %10 = vsyncpa [#allocation5], 0 }
   0x3   :  { %11 = vsyncpa [#allocation8], 0 }
   0x4   :  { %13 = vsyncpa [#allocation8 + $0x1], 0 }
   0x5   :  { %14 = vsyncpa [#allocation6], 0 }
   0x6   :  { %16 = vsyncpa [#allocation6 + $0x1], 0  ;;  %s997_s15 = smov 0   ;;  %s999_s16 = smov 0  }
   0x7   :  { %s1001_s17 = smov 0   ;;  %s1003_s18 = smov 0  }
   0x8   :  { %s1005_s19 = smov 0   ;;  %s1007_s20 = smov 0  }
   0x9   :  { %s1009_s21 = smov 0   ;;  %s1011_s22 = smov 0  }
   0xa LB: > { %1247 = sst [smem:[#allocation13_spill]] %s943_s17  ;;  %s651_s23 = sadd.s32 4294967295, %s963_s22   ;;  %s963_s22 = sphi %s1011_s22, %s22_s22   ;;  %s959_s21 = sphi %s1009_s21, %s1266_s21   ;;  %s955_s20 = sphi %s1007_s20, %s1265_s20   ;;  %s951_s19 = sphi %s1005_s19, %s1264_s19   ;;  %s947_s18 = sphi %s1003_s18, %s1263_s18   ;;  %s943_s17 = sphi %s1001_s17, %s1262_s17   ;;  %s939_s16 = sphi %s999_s16, %s1268_s16   ;;  %s935_s15 = sphi %s997_s15, %s1267_s15  }
   0xb   : > { %1248 = sst [smem:[#allocation14_spill]] %s955_s20  ;;  %s652_s24 = sadd.s32 4294967294, %s963_s22  }
   0xc   : > { %1249 = sst [smem:[#allocation15_spill]] %s959_s21  ;;  %s31_s25 = sadd.s32 1, %s955_s20 }
   0xd   : > { %s34_s26 = sadd.s32 1, %s959_s21  ;;  %p32_p0 = scmp.ge.s32.totalorder %s31_s25, 2 }
   0xe   : > { %s653_s27 = sshll.u32 %s959_s21, 1  ;;  %s66_s29 = sadd.s32 1, %s943_s17 }
   0xf   : > { %s1043_s28 = sadd.s32 %s955_s20, %s653_s27  ;;  %s1270_s25 = smov (%p32_p0, %s31_s25), 0 }
  0x10   : > { %1250 = sst [smem:[#allocation16_spill]] %s1270_s25  ;;  %s1272_s26 = smov (!%p32_p0, %s34_s26), %s959_s21 }
  0x11   : > { %p73_p1 = scmp.ne.s32.totalorder %s943_s17, %s939_s16  ;;  %p74_p2 = scmp.eq.s32.totalorder %s963_s22, 0 }
  0x12   : > { %p36_p3 = scmp.ge.s32.totalorder %s1272_s26, 2  ;;  %p79_p4 = scmp.ne.s32.totalorder %s939_s16, %s935_s15 }
  0x13   : > { %p1054_p5 = por %p74_p2, %p73_p1  ;;  %p1058_p6 = scmp.eq.s32.totalorder %s651_s23, 0 }
  0x14   : > { %s1274_s26 = smov (%p36_p3, %s1272_s26), 0  ;;  %p107_p8 = scmp.eq.s32.totalorder %s651_s23, 3 }
  0x15   : > { %1253 = sst [smem:[#allocation17_spill]] %s1274_s26  ;;  %p1066_p7 = por %p1058_p6, %p79_p4 }
  0x16   : > { %s654_s7 = sshll.u32 %s1274_s26, 1  ;;  %p113_p9 = scmp.eq.s32.totalorder %s652_s24, 3 }
  0x17   : > { %s62_s8 = sadd.s32 %s654_s7, %s1270_s25  ;;  %p1072_p10 = por %p107_p8, %p73_p1 }
  0x18   : > { %s63_s10 = ssub.s32 %s1043_s28, %s62_s8  ;;  %p1077_p11 = por %p113_p9, %p79_p4 }
  0x19   : > { %p64_p12 = scmp.eq.s32.totalorder %s63_s10, 0  ;;  %p657_p13 = scmp.ge.s32.totalorder %s963_s22, 1 }
  0x1a   : > { %p172_p0 = scmp.lt.s32.totalorder %s963_s22, 5  ;;  %s1259_s0 = sld [smem:[#allocation19_spill]] }
  0x1b   : > { %s1084_s12 = scalar_select %p64_p12, %s943_s17, %s66_s29  }
  0x1c   : > { %p1086_p2 = pnand %p657_p13, %p172_p0  ;;  %s965_s27 = smov [#allocation4]  }
  0x1d   : > { %1257 = sst [smem:[#allocation18_spill]] %s1084_s12  ;;  %s186_s7 = sshll.u32 %s965_s27, 4  ;;  %s187_s7 = int_to_ptr.vmem [resolvable:$true] %s186_s7 }
  0x1e   : > { %p700_p1 = pneg %p1086_p2  ;;  %p659_p4 = scmp.ge.s32.totalorder %s963_s22, 4 }
  0x20   : > { %s184_s24 = sshll.u32 %s1259_s0, 4  ;;  %p701_p3 = pnand %p700_p1, %p1058_p6  ;;  %s185_s24 = int_to_ptr.hbm [resolvable:$true] %s184_s24 }
  0x21   : > { %193 = sbr.rel (%p659_p4) target bundleno = 64 (0x40), region = 20 }
  0x22   : > { %703 = dma.hbm_to_vmem [thread:$0]  (!%p701_p3), %s185_s24, 128, %s187_s7, [#allocation5]  }
  0x26   : > { %196 = sbr.rel (!%p1054_p5) target bundleno = 64 (0x40), region = 24  ;;  %s197_s29 = sand.u32 (%p1054_p5), 1, %s943_s17  }
  0x27   : > { %s662_s8 = sshll.u32 (%p1054_p5), %s1043_s28, 2  ;;  %s660_s10 = sshll.u32 (%p1054_p5), %s197_s29, 7 }
  0x28   : > { %s205_s14 = ssub.s32 (%p1054_p5), 15, %s662_s8  ;;  %s1105_s24 = scalar_lea.sflag (%p1054_p5), [#allocation8], %s197_s29 }
  0x29   : > { %p206_p8 = scmp.lt.s32.totalorder (%p1054_p5), %s205_s14, 4  ;;  %s201_s7 = scalar_lea.vmem (%p1054_p5), [#allocation7], %s660_s10 }
  0x2b   : > { %s1276_s14 = smov (!%p206_p8, %s205_s14), 4 }
  0x2c   : > { %s663_s23 = sshll.u32 %s1276_s14, 5 }
  0x2d   : > { %s209_s27 = ssub.s32 128, %s663_s23 }
  0x2e   : > { %s210_s0 = sshll.u32 %s209_s27, 4 }
  0x2f   : > { %211 = vsyncadd %s1105_s24, %s210_s0  ;;  %p1108_p5 = scmp.ne.s32.totalorder %s663_s23, 0  ;;  %s689_s8 = sshll.u32 %s1043_s28, 5 }
  0x30   : > { %s214_s21 = scalar_lea.hbm %s1237_s1, %s689_s8  ;;  %s666_s20 = sshll.u32 %s1276_s14, 3 }
  0x31   : > { %s217_s27 = sshll.u32 %s214_s21, 4  ;;  %s219_s29 = sshll.u32 %s201_s7, 4  ;;  %s218_s27 = int_to_ptr.hbm [resolvable:$true] %s217_s27  ;;  %s220_s29 = int_to_ptr.vmem [resolvable:$true] %s219_s29 }
  0x32   : > { %s691_s10 = sshll.u32 %s1276_s14, 9  ;;  %s841_s12 = sshra.s32 %s220_s29, 4  ;;  %s842_s12 = int_to_ptr.vmem [resolvable:$true] %s841_s12 }
  0x33   : > { %s824_s0 = sshrl.u32 %s691_s10, 4  ;;  %s966_s23 = smov [#allocation7]  }
  0x34   : > { %s848_s17 = scalar_lea.vmem %s842_s12, %s824_s0  ;;  %s852_s28 = scalar_lea.vmem %s966_s23, 256 }
  0x35   : > { %p849_p9 = scmp.ne.s32.totalorder %s842_s12, %s848_s17  ;;  %p854_p0 = scmp.lt.s32.totalorder %s852_s28, %s848_s17 }
  0x37   : > { %p850_p12 = pnand %p849_p9, %p1108_p5 }
  0x39   : > { %p851_p13 = pneg %p850_p12 }
  0x3b   : > { %p856_p1 = pnand %p854_p0, %p851_p13 }
  0x3d   : > { %859 = shalt.err (!%p856_p1)
}
  0x3e   : > { %s967_s25 = smov 1920   ;;  %s968_s21 = smov 512  }
  0x3f   : > { %225 = dma.hbm_to_vmem [thread:$0]  (%p1108_p5), %s218_s27, %s691_s10, %s220_s29, %s1105_s24, %s967_s25, %s968_s21, %s666_s20  }
  0x40 PF: > { %231 = sbr.rel (%p1086_p2) target bundleno = 623 (0x26f), region = 28 }
  0x45   : > { %922 = dma.done.wait (%p1058_p6), [#allocation5], 128  }
  0x46   : > { %924 = vsyncadd (%p1058_p6), [#allocation5], 4294967168  ;;  %s1130_s17 = sand.u32 1, %s939_s16  }
  0x47   : > { %s671_s26 = sshll.u32 %s1130_s17, 7  ;;  %s239_s12 = scalar_lea.sflag [#allocation8], %s1130_s17 }
  0x48   : > { %s1134_s20 = scalar_lea.vmem [#allocation7], %s671_s26 }
  0x49   : > { %926 = dma.done.wait (%p1066_p7), %s239_s12, 2048  }
  0x4a   : > { %928 = vsyncadd (%p1066_p7), %s239_s12, 4294965248  ;;  %s672_s5 = sshll.u32 %s1130_s17, 5  ;;  %p286_p6 = scmp.lt.s32.totalorder %s951_s19, 1 }
  0x4b   : > { %s1153_s10 = scalar_lea.vmem [#allocation9], %s672_s5  ;;  %p675_p7 = scmp.ne.s32.totalorder %s947_s18, 0 }
  0x4c   : > { %s287_s13 = scalar_select %p286_p6, %s951_s19, 1 }
  0x4d   : > { %297 = sbr.rel (%p675_p7) target bundleno = 85 (0x55), region = 40 }
  0x4e   : > { %s673_s14 = sshll.u32 %s287_s13, 3 }
  0x4f   : > { %s1146_s30 = scalar_lea.vmem %s1239_s3, %s673_s14  ;;  %s1151_s29 = scalar_lea.vmem %s1240_s4, %s673_s14 }
  0x52   : > { %vm298_vm0 = vcmask 7168   ;;  %v969_v0 = vmov -1e+30   ;;  %v970_v1 = vmov 0.0  }
  0x53   : > { %299 = vst.msk [vmem:[#allocation2] sm:$0xff] %vm298_vm0, %v969_v0 }
  0x54   : > { %300 = vst.msk [vmem:[#allocation3] sm:$0xff] %vm298_vm0, %v970_v1 }
  0x55 PF: > { %v316_v2 = vld [vmem:[%s1134_s20 + $0x70] sm:$0xff]  ;;  %v317_v3 = vld [vmem:[%s1134_s20 + $0x78] sm:$0xff]  ;;  %v314_v8 = vld [vmem:[%s1134_s20 + $0x60] sm:$0xff]  ;;  %vm318_vm1 = vcmask 261120   ;;  %s680_s6 = sshll.u32 %s951_s19, 1  ;;  %v404_v19 = vlaneseq  ;;  %v971_v40 = vmov 0  }
  0x56   : > { %v312_v4 = vld [vmem:[%s1134_s20 + $0x50] sm:$0xff]  ;;  %374 = vmatpush.msra.mxu2 %v316_v2  ;;  %394 = vmatpush.msra.mxu3 %v317_v3  ;;  %v313_v5 = vld [vmem:[%s1134_s20 + $0x58] sm:$0xff]  ;;  %v315_v9 = vld [vmem:[%s1134_s20 + $0x68] sm:$0xff]  ;;  %s1178_s0 = sadd.s32 %s947_s18, %s680_s6  ;;  %vm462_vm6 = vcmask 7168   ;;  %p682_p2 = scmp.ne.s32.totalorder %s947_s18, 1 }
  0x57   : > { %v308_v6 = vld [vmem:[%s1134_s20 + $0x30] sm:$0xff]  ;;  %v309_v7 = vld [vmem:[%s1134_s20 + $0x38] sm:$0xff]  ;;  %v310_v10 = vld [vmem:[%s1134_s20 + $0x40] sm:$0xff]  ;;  %334 = vmatpush.msra.mxu0 %v314_v8  ;;  %354 = vmatpush.msra.mxu1 %v315_v9  ;;  %v405_v20 = vand.u32 127, %v404_v19  ;;  %s681_s23 = sshll.u32 %s1178_s0, 9 }
  0x58   : > { %375 = vmatpush.msra.mxu2 %v312_v4  ;;  %395 = vmatpush.msra.mxu3 %v313_v5  ;;  %v304_v11 = vld [vmem:[%s1134_s20 + $0x10] sm:$0xff]  ;;  %v305_v12 = vld [vmem:[%s1134_s20 + $0x18] sm:$0xff]  ;;  %v311_v13 = vld [vmem:[%s1134_s20 + $0x48] sm:$0xff]  ;;  %v410_v22 = vstv %s681_s23 }
  0x59   : > { %v301_v14 = vld [vmem:[#allocation4] sm:$0xff]  ;;  %335 = vmatpush.msra.mxu0 %v310_v10  ;;  %355 = vmatpush.msra.mxu1 %v311_v13  ;;  %v306_v15 = vld [vmem:[%s1134_s20 + $0x20] sm:$0xff]  ;;  %v307_v16 = vld [vmem:[%s1134_s20 + $0x28] sm:$0xff]  ;;  %v406_v21 = vadd.s32 128, %v405_v20  ;;  %v407_v23 = vadd.s32 256, %v405_v20  ;;  %v408_v24 = vadd.s32 384, %v405_v20  ;;  %v411_v25 = vadd.s32 %v410_v22, %v405_v20 }
  0x5a   : > { %376 = vmatpush.msra.mxu2 %v308_v6  ;;  %396 = vmatpush.msra.mxu3 %v309_v7  ;;  %v302_v17 = vld [vmem:[%s1134_s20] sm:$0xff]  ;;  %v303_v18 = vld [vmem:[%s1134_s20 + $0x8] sm:$0xff] }
  0x5b   : > { %336 = vmatpush.msra.mxu0 %v306_v15  ;;  %356 = vmatpush.msra.mxu1 %v307_v16  ;;  %v412_v26 = vadd.s32 %v410_v22, %v406_v21  ;;  %v413_v27 = vadd.s32 %v410_v22, %v407_v23  ;;  %v414_v28 = vadd.s32 %v410_v22, %v408_v24  ;;  %vm415_vm2 = vcmp.lt.s32.totalorder %v411_v25, 1920  ;;  %v432_v41 = vld [vmem:[#allocation2] sm:$0xff]  ;;  %v434_v63 = vld [vmem:[#allocation3] sm:$0xff] }
  0x5c   : > { %377 = vmatpush.msra.mxu2 %v304_v11  ;;  %397 = vmatpush.msra.mxu3 %v305_v12 }
  0x5d   : > { %678 = vmatmul.msk.f32.vlgmr.msra.gmra.mxu2 %vm318_vm1, %v301_v14  ;;  %679 = vmatmul.msk.f32.vlgmr.msra.gmra.mxu3 %vm318_vm1, %v301_v14  ;;  %vm416_vm3 = vcmp.lt.s32.totalorder %v412_v26, 1920  ;;  %vm417_vm4 = vcmp.lt.s32.totalorder %v413_v27, 1920  ;;  %vm418_vm5 = vcmp.lt.s32.totalorder %v414_v28, 1920 }
  0x5e   : > { %337 = vmatpush.msra.mxu0 %v302_v17  ;;  %357 = vmatpush.msra.mxu1 %v303_v18 }
  0x5f   : > { %676 = vmatmul.msk.f32.vlgmr.msra.gmra.mxu0 %vm318_vm1, %v301_v14  ;;  %677 = vmatmul.msk.f32.vlgmr.msra.gmra.mxu1 %vm318_vm1, %v301_v14 }
  0x60   : > { %781 = vset.pattern.permute.xlu0 %v971_v40 }
  0xdc   : > { %v339_v29 = vpop.f32.mrf.mxu0  ;;  %v359_v30 = vpop.f32.mrf.mxu1 }
  0xdd   : > { %v419_v31 = vsel %vm415_vm2, %v339_v29, -1e+30  ;;  %v420_v32 = vsel %vm416_vm3, %v359_v30, -1e+30 }
  0xde   : > { %423 = vst [vmem:[%s1153_s10] sm:$0xff] %v419_v31  ;;  %v427_v35 = vmax.f32 %v419_v31, %v420_v32 }
  0xdf   : > { %424 = vst [vmem:[%s1153_s10 + $0x8] sm:$0xff] %v420_v32 }
  0xe0   : > { %v379_v33 = vpop.f32.mrf.mxu2  ;;  %v399_v34 = vpop.f32.mrf.mxu3 }
  0xe1   : > { %v421_v36 = vsel %vm417_vm4, %v379_v33, -1e+30  ;;  %v422_v37 = vsel %vm418_vm5, %v399_v34, -1e+30 }
  0xe2   : > { %425 = vst [vmem:[%s1153_s10 + $0x10] sm:$0xff] %v421_v36  ;;  %v428_v38 = vmax.f32 %v421_v36, %v422_v37 }
  0xe3   : > { %426 = vst [vmem:[%s1153_s10 + $0x18] sm:$0xff] %v422_v37 }
  0xe4   : > { %v429_v39 = vmax.f32 %v427_v35, %v428_v38 }
  0xe6   : > { %430 = vmax.xlane.f32.xlu0 %v429_v39 }
 0x159   : > { %v431_v42 = vpop.xlane.xlu0 %430 }
 0x15a   : > { %v433_v43 = vmax.f32 %v432_v41, %v431_v42 }
 0x15c   : > { %v435_v44 = vsub.f32 %v432_v41, %v433_v43  ;;  %464 = vst.msk [vmem:[#allocation2] sm:$0xff] %vm462_vm6, %v433_v43  ;;  %441 = vperm.xlu0 %781, %v433_v43  }
 0x15e   : > { %v436_v61 = vmul.f32 1.442695, %v435_v44 }
 0x1ce   : > { %v442_v45 = vpop.permute.xlu0 %441 }
 0x1cf   : > { %v444_v46 = vsub.f32 %v419_v31, %v442_v45  ;;  %v445_v47 = vsub.f32 %v420_v32, %v442_v45  ;;  %v446_v48 = vsub.f32 %v421_v36, %v442_v45  ;;  %v447_v49 = vsub.f32 %v422_v37, %v442_v45 }
 0x1d1   : > { %v448_v50 = vmul.f32 1.442695, %v444_v46  ;;  %v450_v51 = vmul.f32 1.442695, %v445_v47  ;;  %v452_v52 = vmul.f32 1.442695, %v446_v48 }
 0x1d2   : > { %v454_v53 = vmul.f32 1.442695, %v447_v49 }
 0x1d3   : > { %782 = vpow2.f32 %v448_v50 }
 0x1d4   : > { %784 = vpow2.f32 %v450_v51 }
 0x1d5   : > { %786 = vpow2.f32 %v452_v52 }
 0x1d6   : > { %788 = vpow2.f32 %v454_v53 }
 0x1d7   : > { %790 = vpow2.f32 %v436_v61 }
 0x1d9   : > { %v783_v54 = vpop.eup %782 }
 0x1da   : > { %v785_v55 = vpop.eup %784 }
 0x1db   : > { %v456_v56 = vadd.f32 %v785_v55, %v783_v54  ;;  %v787_v57 = vpop.eup %786 }
 0x1dc   : > { %v789_v59 = vpop.eup %788 }
 0x1dd   : > { %v457_v58 = vadd.f32 %v787_v57, %v456_v56  ;;  %v791_v62 = vpop.eup %790 }
 0x1de   : > { %v438_v0 = vmul.f32 %v791_v62, %v434_v63 }
 0x1df   : > { %v458_v60 = vadd.f32 %v789_v59, %v457_v58 }
 0x1e1   : > { %459 = vadd.xlane.f32.xlu1 %v458_v60 }
 0x253   : > { %468 = sbr.rel (%p682_p2) target bundleno = 608 (0x260), region = 44 }
 0x254   : > { %v460_v1 = vpop.xlane.xlu1 %459 }
 0x255   : > { %v461_v2 = vadd.f32 %v460_v1, %v438_v0 }
 0x257   : > { %463 = vst.msk [vmem:[#allocation3] sm:$0xff] %vm462_vm6, %v461_v2 }
 0x258   : > { %v469_v3 = vld [vmem:[#allocation2] sm:$0xff] }
 0x259   : > { %470 = vst.msk [vmem:[%s1146_s30] sm:$0xff] %vm462_vm6, %v469_v3 }
 0x25e   : > { %v471_v4 = vld [vmem:[#allocation3] sm:$0xff] }
 0x25f   : > { %472 = vst.msk [vmem:[%s1151_s29] sm:$0xff] %vm462_vm6, %v471_v4 }
 0x260 PF: > { %s692_s19 = sshll.u32 %s1178_s0, 5  ;;  %s497_s18 = sshll.u32 %s1153_s10, 4  ;;  %s498_s18 = int_to_ptr.vmem [resolvable:$true] %s497_s18 }
 0x261   : > { %s495_s21 = scalar_lea.hbm %s1238_s2, %s692_s19  ;;  %s474_s12 = scalar_lea.sflag [#allocation6], %s1130_s17 }
 0x262   : > { %s499_s26 = sshll.u32 %s495_s21, 4  ;;  %s881_s24 = scalar_lea.hbm %s1238_s2, 128  ;;  %s500_s26 = int_to_ptr.hbm [resolvable:$true] %s499_s26 }
 0x263   : > { %s875_s20 = sshra.s32 %s500_s26, 4  ;;  %s876_s20 = int_to_ptr.hbm [resolvable:$true] %s875_s20 }
 0x264   : > { %s877_s5 = scalar_lea.hbm %s876_s20, 32  ;;  %p882_p5 = scmp.lt.s32.totalorder %s876_s20, %s1238_s2 }
 0x265   : > { %p878_p3 = scmp.ne.s32.totalorder %s876_s20, %s877_s5  ;;  %p883_p9 = scmp.lt.s32.totalorder %s881_s24, %s877_s5 }
 0x267   : > { %p879_p4 = pnand %p878_p3, %p1072_p10  ;;  %p884_p12 = por %p883_p9, %p882_p5 }
 0x269   : > { %p880_p8 = pneg %p879_p4 }
 0x26b   : > { %p885_p13 = pnand %p884_p12, %p880_p8 }
 0x26d   : > { %888 = shalt.err (!%p885_p13)
}
 0x26e   : > { %698 = dma.vmem_to_hbm [thread:$0]  (%p1072_p10), %s498_s18, 512, %s500_s26, %s474_s12  }
 0x26f PF: > { %p710_p0 = scmp.ge.s32.totalorder %s963_s22, 2  ;;  %s517_s17 = sand.u32 1, %s935_s15  }
 0x270   : > { %s518_s8 = scalar_lea.sflag [#allocation6], %s517_s17 }
 0x271   : > { %p705_p1 = pnand %p710_p0, %p1077_p11 }
 0x273   : > { %p706_p6 = pneg %p705_p1 }
 0x275   : > { %930 = dma.done.wait (%p706_p6), %s518_s8, 512  }
 0x276   : > { %932 = vsyncadd (%p706_p6), %s518_s8, 4294966784  ;;  %s22_s22 = sadd.s32 1, %s963_s22   ;;  %s1261_s27 = sld [smem:[#allocation13_spill]] }
 0x277   : > { %p19_p7 = scmp.ge.s32.totalorder %s22_s22, 6   ;;  %s1262_s17 = sld [smem:[#allocation18_spill]] }
 0x278   : > { %s1263_s18 = sld [smem:[#allocation14_spill]]  ;;  %s1267_s15 = smov %s939_s16 }
 0x279   : > { %s1264_s19 = sld [smem:[#allocation15_spill]]  ;;  %21 = sbr.rel (!%p19_p7) target bundleno = 10 (0xa), region = 110 }
 0x27a   : > { %s1265_s20 = sld [smem:[#allocation16_spill]] }
 0x27b   : > { %s1266_s21 = sld [smem:[#allocation17_spill]] }
 0x27c   : > { %s1268_s16 = smov %s1261_s27 }
 0x27e   :  { %538 = vsyncpa [#allocation5], 1 }
 0x27f   :  { %540 = vsyncpa [#allocation5 + $0x1], 1 }
 0x280   :  { %541 = vsyncpa [#allocation8], 1 }
 0x281   :  { %543 = vsyncpa [#allocation8 + $0x1], 1 }
 0x282   :  { %544 = vsyncpa [#allocation6], 1 }
 0x283   :  { %546 = vsyncpa [#allocation6 + $0x1], 1 }

</bundles_post_ra>
